<compile_context>
chip_gen: v7x
topology: tpu7x:2x2x1
jax: 0.10.0
libtpu: 0.0.40
codegen_flags: <defaults>
</compile_context>

<pallas_src>
import functools

import jax
import jax.numpy as jnp
from jax.experimental import pallas as pl
from jax.experimental.pallas import tpu as pltpu


def autopad(k, p=None, d=1):
    """Pad to 'same' shape outputs (mirrors the PyTorch helper)."""
    if d > 1:
        k = d * (k - 1) + 1 if isinstance(k, int) else [d * (x - 1) + 1 for x in k]
    if p is None:
        p = k // 2 if isinstance(k, int) else [x // 2 for x in k]
    return p


def _round_up(x, m):
    return ((x + m - 1) // m) * m


def _conv_bn_act_kernel(a_ref, b_ref, scale_ref, bias_ref, o_ref, acc_ref,
                        *, apply_act: bool):
    """One (tm, tn) output tile; accumulates over the K grid axis."""
    kk = pl.program_id(2)

    @pl.when(kk == 0)
    def _():
        acc_ref[...] = jnp.zeros_like(acc_ref)

    acc_ref[...] += jnp.dot(a_ref[...], b_ref[...],
                            preferred_element_type=jnp.float32)

    @pl.when(kk == pl.num_programs(2) - 1)
    def _():
        # Fused BatchNorm affine (per output channel) + SiLU epilogue.
        y = acc_ref[...] * scale_ref[...] + bias_ref[...]
        if apply_act:
            y = y * (1.0 / (1.0 + jnp.exp(-y)))   # SiLU
        o_ref[...] = y.astype(o_ref.dtype)


@functools.partial(
    jax.jit,
    static_argnames=("k", "s", "p", "d", "apply_act", "tm", "tn", "tk"))
def conv_bn_silu(x, w, scale, bias, *, k, s, p, d, apply_act=True,
                 tm=128, tn=128, tk=128):
    """x: (B, C1, H, W) NCHW;  w: (C2, C1, k, k);  scale/bias: (C2,)."""
    B, C1, H, W = x.shape
    C2 = w.shape[0]
    Ho = (H + 2 * p - d * (k - 1) - 1) // s + 1
    Wo = (W + 2 * p - d * (k - 1) - 1) // s + 1

    # ---- glue: im2col (NCHW -> NHWC -> patches) ----
    x_nhwc = jnp.transpose(x, (0, 2, 3, 1))
    xp = jnp.pad(x_nhwc, ((0, 0), (p, p), (p, p), (0, 0)))
    cols = []
    for kh in range(k):
        for kw in range(k):
            patch = xp[:, kh * d: kh * d + s * (Ho - 1) + 1: s,
                          kw * d: kw * d + s * (Wo - 1) + 1: s, :]
            cols.append(patch)                       # (B, Ho, Wo, C1)
    a = jnp.stack(cols, axis=3).reshape(B * Ho * Wo, k * k * C1)
    bmat = jnp.transpose(w, (2, 3, 1, 0)).reshape(k * k * C1, C2)

    M, K = a.shape
    N = C2
    Mp, Kp, Np = _round_up(M, tm), _round_up(K, tk), _round_up(N, tn)

    a = jnp.pad(a, ((0, Mp - M), (0, Kp - K)))
    bmat = jnp.pad(bmat, ((0, Kp - K), (0, Np - N)))
    scale_p = jnp.pad(scale.astype(jnp.float32), (0, Np - N)).reshape(1, Np)
    bias_p = jnp.pad(bias.astype(jnp.float32), (0, Np - N)).reshape(1, Np)

    kernel = functools.partial(_conv_bn_act_kernel, apply_act=apply_act)

    out = pl.pallas_call(
        kernel,
        out_shape=jax.ShapeDtypeStruct((Mp, Np), x.dtype),
        grid_spec=pltpu.PrefetchScalarGridSpec(
            num_scalar_prefetch=0,
            grid=(Mp // tm, Np // tn, Kp // tk),
            in_specs=[
                pl.BlockSpec((tm, tk), lambda i, j, kk: (i, kk)),   # patches
                pl.BlockSpec((tk, tn), lambda i, j, kk: (kk, j)),   # weights
                pl.BlockSpec((1, tn), lambda i, j, kk: (0, j)),     # BN scale
                pl.BlockSpec((1, tn), lambda i, j, kk: (0, j)),     # BN bias
            ],
            out_specs=pl.BlockSpec((tm, tn), lambda i, j, kk: (i, j)),
            scratch_shapes=[pltpu.VMEM((tm, tn), jnp.float32)],
        ),
        compiler_params=pltpu.CompilerParams(
            dimension_semantics=("parallel", "parallel", "arbitrary")),
    )(a, bmat, scale_p, bias_p)

    out = out[:M, :N].reshape(B, Ho, Wo, C2)
    return jnp.transpose(out, (0, 3, 1, 2))          # back to NCHW


class Conv:
    """Mirror of the PyTorch Conv module (Conv2d(bias=False) + BN2d + SiLU), forward only."""

    def __init__(self, c1, c2, k=1, s=1, p=None, g=1, d=1, act=True, *,
                 key=None, eps=1e-5):
        assert g == 1, "grouped convolution not implemented"  # TODO(synk)
        self.c1, self.c2, self.k, self.s, self.d = c1, c2, k, s, d
        self.p = autopad(k, p, d)
        self.eps = eps
        self.apply_act = act is True     # True -> SiLU, otherwise identity

        if key is None:
            key = jax.random.PRNGKey(0)
        # PyTorch Conv2d default init: U(-b, b), b = 1/sqrt(fan_in)
        bound = 1.0 / (c1 * k * k) ** 0.5
        self.weight = jax.random.uniform(
            key, (c2, c1, k, k), minval=-bound, maxval=bound, dtype=jnp.float32)

        # BatchNorm2d parameters / running stats (fresh module defaults).
        self.gamma = jnp.ones((c2,), jnp.float32)
        self.beta = jnp.zeros((c2,), jnp.float32)
        self.running_mean = jnp.zeros((c2,), jnp.float32)
        self.running_var = jnp.ones((c2,), jnp.float32)

    def _folded_bn(self):
        scale = self.gamma / jnp.sqrt(self.running_var + self.eps)
        bias = self.beta - self.running_mean * scale
        return scale, bias

    def __call__(self, x):
        scale, bias = self._folded_bn()
        return conv_bn_silu(x, self.weight, scale, bias,
                            k=self.k, s=self.s, p=self.p, d=self.d,
                            apply_act=self.apply_act)


if __name__ == "__main__":
    key = jax.random.PRNGKey(0)
    kx, kw = jax.random.split(key)

    # Small shapes consistent with the module: batch=2, c1=4, spatial=16, c2=8, k=3.
    x = jax.random.normal(kx, (2, 4, 16, 16), dtype=jnp.float32)
    conv = Conv(4, 8, k=3, s=1, key=kw)

    out = jax.block_until_ready(conv(x))

    # ---- reference in plain JAX ----
    ref = jax.lax.conv_general_dilated(
        x, conv.weight, window_strides=(conv.s, conv.s),
        padding=[(conv.p, conv.p), (conv.p, conv.p)],
        rhs_dilation=(conv.d, conv.d),
        dimension_numbers=("NCHW", "OIHW", "NCHW"),
        precision=jax.lax.Precision.HIGHEST)
    scale, bias = conv._folded_bn()
    ref = ref * scale.reshape(1, -1, 1, 1) + bias.reshape(1, -1, 1, 1)
    ref = ref * (1.0 / (1.0 + jnp.exp(-ref)))          # SiLU

    assert out.shape == ref.shape, (out.shape, ref.shape)
    max_err = float(jnp.max(jnp.abs(out - ref)))
    assert jnp.allclose(out, ref, atol=2e-3, rtol=2e-3), f"max_err={max_err}"

    print("KERNEL_OK")
</pallas_src>

<mosaic_0001>
module attributes {stable_mosaic.version = 11 : i64} {
  func.func @_conv_bn_act_kernel(%arg0: i32, %arg1: i32, %arg2: i32, %arg3: memref<128x128xf32, #tpu.memory_space<vmem>>, %arg4: memref<128x128xf32, #tpu.memory_space<vmem>>, %arg5: memref<1x128xf32, #tpu.memory_space<vmem>>, %arg6: memref<1x128xf32, #tpu.memory_space<vmem>>, %arg7: memref<128x128xf32, #tpu.memory_space<vmem>>, %arg8: memref<128x128xf32, #tpu.memory_space<vmem>>) attributes {dimension_semantics = [#tpu.dimension_semantics<parallel>, #tpu.dimension_semantics<parallel>, #tpu.dimension_semantics<arbitrary>], iteration_bounds = array<i64: 4, 1, 1>, scalar_prefetch = 0 : i64, scratch_operands = 1 : i64, tpu.core_type = #tpu.core_type<tc>, window_params = [{transform_indices = @transform_0, window_bounds = array<i64: 128, 128>}, {transform_indices = @transform_1, window_bounds = array<i64: 128, 128>}, {transform_indices = @transform_2, window_bounds = array<i64: 1, 128>}, {transform_indices = @transform_3, window_bounds = array<i64: 1, 128>}, {transform_indices = @transform_4, window_bounds = array<i64: 128, 128>}]} {
    %c0_i32 = arith.constant 0 : i32
    %0 = arith.cmpi eq, %arg2, %c0_i32 : i32
    %1 = arith.extui %0 : i1 to i32
    %c0_i32_0 = arith.constant 0 : i32
    %2 = arith.cmpi ne, %1, %c0_i32_0 : i32
    scf.if %2 {
      %cst_10 = arith.constant 0.000000e+00 : f32
      %12 = vector.broadcast %cst_10 : f32 to vector<128x128xf32>
      %c0_11 = arith.constant 0 : index
      %c0_12 = arith.constant 0 : index
      %13 = vector.load %arg8[%c0_11, %c0_12] : memref<128x128xf32, #tpu.memory_space<vmem>>, vector<128x128xf32>
      tpu.vector_store %arg8[%c0_11, %c0_12], %12 {strides = array<i32>} : memref<128x128xf32, #tpu.memory_space<vmem>>, vector<128x128xf32>,
    } else {
    }
    %c0 = arith.constant 0 : index
    %c0_1 = arith.constant 0 : index
    %3 = vector.load %arg8[%c0, %c0_1] : memref<128x128xf32, #tpu.memory_space<vmem>>, vector<128x128xf32>
    %c0_2 = arith.constant 0 : index
    %c0_3 = arith.constant 0 : index
    %4 = vector.load %arg3[%c0_2, %c0_3] : memref<128x128xf32, #tpu.memory_space<vmem>>, vector<128x128xf32>
    %c0_4 = arith.constant 0 : index
    %c0_5 = arith.constant 0 : index
    %5 = vector.load %arg4[%c0_4, %c0_5] : memref<128x128xf32, #tpu.memory_space<vmem>>, vector<128x128xf32>
    %cst = arith.constant dense<0.000000e+00> : vector<128x128xf32>
    %6 = tpu.matmul %4, %5, %cst {dimension_numbers = #tpu.dot_dimension_numbers<[1], [0], [0], [1], [0, 0, 1, 1], [], []>} : vector<128x128xf32>, vector<128x128xf32>, vector<128x128xf32> -> vector<128x128xf32>
    %7 = arith.addf %3, %6 : vector<128x128xf32>
    %c0_6 = arith.constant 0 : index
    %c0_7 = arith.constant 0 : index
    %8 = vector.load %arg8[%c0_6, %c0_7] : memref<128x128xf32, #tpu.memory_space<vmem>>, vector<128x128xf32>
    tpu.vector_store %arg8[%c0_6, %c0_7], %7 {strides = array<i32>} : memref<128x128xf32, #tpu.memory_space<vmem>>, vector<128x128xf32>,
    %c0_i32_8 = arith.constant 0 : i32
    %9 = arith.cmpi eq, %arg2, %c0_i32_8 : i32
    %10 = arith.extui %9 : i1 to i32
    %c0_i32_9 = arith.constant 0 : i32
    %11 = arith.cmpi ne, %10, %c0_i32_9 : i32
    scf.if %11 {
      %c0_10 = arith.constant 0 : index
      %c0_11 = arith.constant 0 : index
      %12 = vector.load %arg8[%c0_10, %c0_11] : memref<128x128xf32, #tpu.memory_space<vmem>>, vector<128x128xf32>
      %c0_12 = arith.constant 0 : index
      %c0_13 = arith.constant 0 : index
      %13 = vector.load %arg5[%c0_12, %c0_13] : memref<1x128xf32, #tpu.memory_space<vmem>>, vector<1x128xf32>
      %14 = vector.broadcast %13 : vector<1x128xf32> to vector<128x128xf32>
      %15 = arith.mulf %12, %14 : vector<128x128xf32>
      %c0_14 = arith.constant 0 : index
      %c0_15 = arith.constant 0 : index
      %16 = vector.load %arg6[%c0_14, %c0_15] : memref<1x128xf32, #tpu.memory_space<vmem>>, vector<1x128xf32>
      %17 = vector.broadcast %16 : vector<1x128xf32> to vector<128x128xf32>
      %18 = arith.addf %15, %17 : vector<128x128xf32>
      %cst_16 = arith.constant 0.000000e+00 : f32
      %19 = vector.broadcast %cst_16 : f32 to vector<128x128xf32>
      %20 = arith.subf %19, %18 : vector<128x128xf32>
      %21 = math.exp %20 : vector<128x128xf32>
      %cst_17 = arith.constant 1.000000e+00 : f32
      %22 = vector.broadcast %cst_17 : f32 to vector<128x128xf32>
      %23 = arith.addf %22, %21 : vector<128x128xf32>
      %cst_18 = arith.constant 1.000000e+00 : f32
      %24 = vector.broadcast %cst_18 : f32 to vector<128x128xf32>
      %25 = arith.divf %24, %23 : vector<128x128xf32>
      %26 = arith.mulf %18, %25 : vector<128x128xf32>
      %c0_19 = arith.constant 0 : index
      %c0_20 = arith.constant 0 : index
      %27 = vector.load %arg7[%c0_19, %c0_20] : memref<128x128xf32, #tpu.memory_space<vmem>>, vector<128x128xf32>
      tpu.vector_store %arg7[%c0_19, %c0_20], %26 {strides = array<i32>} : memref<128x128xf32, #tpu.memory_space<vmem>>, vector<128x128xf32>,
    } else {
    }
    return
  }
  func.func @transform_0(%arg0: i32, %arg1: i32, %arg2: i32) -> (i32, i32) {
    %c0_i32 = arith.constant 0 : i32
    return %arg0, %arg2 : i32, i32
  }
  func.func @transform_1(%arg0: i32, %arg1: i32, %arg2: i32) -> (i32, i32) {
    %c0_i32 = arith.constant 0 : i32
    return %arg2, %arg1 : i32, i32
  }
  func.func @transform_2(%arg0: i32, %arg1: i32, %arg2: i32) -> (i32, i32) {
    %c0_i32 = arith.constant 0 : i32
    %c0_i32_0 = arith.constant 0 : i32
    return %c0_i32, %arg1 : i32, i32
  }
  func.func @transform_3(%arg0: i32, %arg1: i32, %arg2: i32) -> (i32, i32) {
    %c0_i32 = arith.constant 0 : i32
    %c0_i32_0 = arith.constant 0 : i32
    return %c0_i32, %arg1 : i32, i32
  }
  func.func @transform_4(%arg0: i32, %arg1: i32, %arg2: i32) -> (i32, i32) {
    %c0_i32 = arith.constant 0 : i32
    return %arg0, %arg1 : i32, i32
  }
}

</mosaic_0001>

<bundles_post_ra>
// kernel: conv_bn_silu.1
= control target key start
LH: loop header
LB: loop body
LE: loop exit
PB: predicated region body
PF: predicated region fallthrough
CT: control target
= control target key end

     0   :  { %s1150_s15 = smov 0   ;;  %s1152_s16 = smov 0   ;;  %s1380_s0 = inlined_call_operand.vmem [shape: f32[512,128], index: 0, kind: input, shape index: {}]   ;;  %s1381_s1 = inlined_call_operand.vmem [shape: f32[128,128], index: 1, kind: input, shape index: {}]   ;;  %s1382_s2 = inlined_call_operand.vmem [shape: f32[1,128], index: 2, kind: input, shape index: {}]   ;;  %s1383_s3 = inlined_call_operand.vmem [shape: f32[1,128], index: 3, kind: input, shape index: {}]   ;;  %s1384_s4 = inlined_call_operand.vmem [shape: f32[512,128], index: 4, kind: output, shape index: {}]  }
   0x1   :  { %s1154_s17 = smov 0  }
   0x2 LB: > { %s33_s18 = sadd.s32 1, %s1119_s16  ;;  %p868_p0 = scmp.ge.s32.totalorder %s1123_s17, 1  ;;  %s1123_s17 = sphi %s1154_s17, %s14_s17   ;;  %s1119_s16 = sphi %s1152_s16, %s1386_s16   ;;  %s1115_s15 = sphi %s1150_s15, %s1385_s15  }
   0x3   : > { %p35_p1 = scmp.ge.s32.totalorder %s33_s18, 4  ;;  %p221_p2 = scmp.lt.s32.totalorder %s1123_s17, 5 }
   0x5   : > { %s1388_s18 = smov (%p35_p1, %s33_s18), 0  ;;  %p222_p3 = pnand %p868_p0, %p221_p2 }
   0x6   : > { %v352_v0 = vld [vmem:[%s1381_s1] sm:$0xff] (!%p222_p3)  ;;  %v353_v1 = vld [vmem:[%s1381_s1 + $0x8] sm:$0xff] (!%p222_p3)  ;;  %v354_v2 = vld [vmem:[%s1381_s1 + $0x10] sm:$0xff] (!%p222_p3)  ;;  %s869_s25 = sshll.u32 (!%p222_p3), %s1115_s15, 4 }
   0x7   : > { %225 = sbr.rel (%p222_p3) target bundleno = 317 (0x13d), region = 36  ;;  %v965_v3 = vpack.c.bf16 (!%p222_p3), %v353_v1, %v352_v0  ;;  %v355_v4 = vld [vmem:[%s1381_s1 + $0x18] sm:$0xff] (!%p222_p3)  ;;  %p268_p4 = scmp.lt.s32.totalorder (!%p222_p3), %s869_s25, 63  ;;  %v356_v6 = vld [vmem:[%s1381_s1 + $0x20] sm:$0xff] (!%p222_p3)  ;;  %v357_v7 = vld [vmem:[%s1381_s1 + $0x28] sm:$0xff] (!%p222_p3) }
   0x8   : > { %v969_v5 = vpack.c.bf16 (!%p222_p3), %v355_v4, %v354_v2  ;;  %v973_v8 = vpack.c.bf16 (!%p222_p3), %v357_v7, %v356_v6  ;;  %v358_v9 = vld [vmem:[%s1381_s1 + $0x30] sm:$0xff] (!%p222_p3)  ;;  %v359_v10 = vld [vmem:[%s1381_s1 + $0x38] sm:$0xff] (!%p222_p3)  ;;  %v360_v14 = vld [vmem:[%s1381_s1 + $0x40] sm:$0xff] (!%p222_p3) }
   0x9   : > { %966 = vmatprep.subr.bf16.mxu0 (!%p222_p3), %v965_v3  ;;  %997 = vmatprep.subr.bf16.mxu1 (!%p222_p3), %v965_v3  ;;  %v977_v13 = vpack.c.bf16 (!%p222_p3), %v359_v10, %v358_v9  ;;  %v361_v15 = vld [vmem:[%s1381_s1 + $0x48] sm:$0xff] (!%p222_p3)  ;;  %v362_v17 = vld [vmem:[%s1381_s1 + $0x50] sm:$0xff] (!%p222_p3)  ;;  %v363_v18 = vld [vmem:[%s1381_s1 + $0x58] sm:$0xff] (!%p222_p3) }
   0xa   : > { %968 = vmatpush3.bf16.msra.mxu0 (!%p222_p3), %v965_v3  ;;  %1005 = vmatpush3.bf16.msra.mxu1 (!%p222_p3), %v965_v3  ;;  %v981_v16 = vpack.c.bf16 (!%p222_p3), %v361_v15, %v360_v14  ;;  %v985_v19 = vpack.c.bf16 (!%p222_p3), %v363_v18, %v362_v17  ;;  %v364_v20 = vld [vmem:[%s1381_s1 + $0x60] sm:$0xff] (!%p222_p3)  ;;  %v365_v21 = vld [vmem:[%s1381_s1 + $0x68] sm:$0xff] (!%p222_p3)  ;;  %v366_v23 = vld [vmem:[%s1381_s1 + $0x70] sm:$0xff] (!%p222_p3) }
   0xb   : > { %970 = vmatprep.subr.bf16.mxu0 (!%p222_p3), %v969_v5  ;;  %998 = vmatprep.subr.bf16.mxu1 (!%p222_p3), %v969_v5  ;;  %v989_v22 = vpack.c.bf16 (!%p222_p3), %v365_v21, %v364_v20  ;;  %v367_v24 = vld [vmem:[%s1381_s1 + $0x78] sm:$0xff] (!%p222_p3)  ;;  %v1245_v40 = vld [vmem:[%s1382_s2] ss:$0 sm:$0xff] (!%p222_p3) }
   0xc   : > { %v993_v25 = vpack.c.bf16 (!%p222_p3), %v367_v24, %v366_v23  ;;  %v1250_v42 = vld [vmem:[%s1383_s3] ss:$0 sm:$0xff] (!%p222_p3) }
   0xe   : > { %s1390_s25 = smov (!%p268_p4, %s869_s25), 63  ;;  %972 = vmatpush3.bf16.msra.mxu0 %v969_v5  ;;  %1006 = vmatpush3.bf16.msra.mxu1 %v969_v5 }
   0xf   : > { %s870_s6 = sshll.u32 %s1390_s25, 3  ;;  %974 = vmatprep.subr.bf16.mxu0 %v973_v8  ;;  %999 = vmatprep.subr.bf16.mxu1 %v973_v8 }
  0x10   : > { %s1200_s13 = scalar_lea.vmem %s1380_s0, %s870_s6  ;;  %s1337_s15 = scalar_lea.vmem %s1384_s4, %s870_s6 }
  0x11   : > { %v336_v11 = vld [vmem:[%s1200_s13] sm:$0xff]  ;;  %v337_v26 = vld [vmem:[%s1200_s13 + $0x8] sm:$0xff]  ;;  %v338_v28 = vld [vmem:[%s1200_s13 + $0x10] sm:$0xff] }
  0x12   : > { %v344_v12 = vld [vmem:[%s1200_s13 + $0x40] sm:$0xff]  ;;  %941 = vmatprep.mubr.f32.mxu0 %v336_v11  ;;  %976 = vmatpush3.bf16.msra.mxu0 %v973_v8  ;;  %v345_v27 = vld [vmem:[%s1200_s13 + $0x48] sm:$0xff]  ;;  %v346_v29 = vld [vmem:[%s1200_s13 + $0x50] sm:$0xff] }
  0x13   : > { %953 = vmatprep.mubr.f32.mxu1 %v344_v12  ;;  %1007 = vmatpush3.bf16.msra.mxu1 %v973_v8  ;;  %v339_v30 = vld [vmem:[%s1200_s13 + $0x18] sm:$0xff]  ;;  %v340_v32 = vld [vmem:[%s1200_s13 + $0x20] sm:$0xff]  ;;  %v341_v34 = vld [vmem:[%s1200_s13 + $0x28] sm:$0xff] }
  0x14   : > { %978 = vmatprep.subr.bf16.mxu0 %v977_v13  ;;  %1000 = vmatprep.subr.bf16.mxu1 %v977_v13  ;;  %v347_v31 = vld [vmem:[%s1200_s13 + $0x58] sm:$0xff]  ;;  %v348_v33 = vld [vmem:[%s1200_s13 + $0x60] sm:$0xff]  ;;  %v349_v35 = vld [vmem:[%s1200_s13 + $0x68] sm:$0xff] }
  0x15   : > { %v342_v36 = vld [vmem:[%s1200_s13 + $0x30] sm:$0xff]  ;;  %v343_v38 = vld [vmem:[%s1200_s13 + $0x38] sm:$0xff] }
  0x16   : > { %980 = vmatpush3.bf16.msra.mxu0 %v977_v13  ;;  %v350_v37 = vld [vmem:[%s1200_s13 + $0x70] sm:$0xff]  ;;  %v351_v39 = vld [vmem:[%s1200_s13 + $0x78] sm:$0xff] }
  0x17   : > { %1008 = vmatpush3.bf16.msra.mxu1 %v977_v13  ;;  %982 = vmatprep.subr.bf16.mxu0 %v981_v16 }
  0x18   : > { %1001 = vmatprep.subr.bf16.mxu1 %v981_v16 }
  0x1a   : > { %984 = vmatpush3.bf16.msra.mxu0 %v981_v16 }
  0x1b   : > { %1009 = vmatpush3.bf16.msra.mxu1 %v981_v16  ;;  %986 = vmatprep.subr.bf16.mxu0 %v985_v19 }
  0x1c   : > { %1002 = vmatprep.subr.bf16.mxu1 %v985_v19 }
  0x1e   : > { %988 = vmatpush3.bf16.msra.mxu0 %v985_v19 }
  0x1f   : > { %1010 = vmatpush3.bf16.msra.mxu1 %v985_v19  ;;  %990 = vmatprep.subr.bf16.mxu0 %v989_v22 }
  0x20   : > { %1003 = vmatprep.subr.bf16.mxu1 %v989_v22 }
  0x22   : > { %992 = vmatpush3.bf16.msra.mxu0 %v989_v22 }
  0x23   : > { %1011 = vmatpush3.bf16.msra.mxu1 %v989_v22  ;;  %994 = vmatprep.subr.bf16.mxu0 %v993_v25 }
  0x24   : > { %1004 = vmatprep.subr.bf16.mxu1 %v993_v25 }
  0x26   : > { %996 = vmatpush3.bf16.msra.mxu0 %v993_v25 }
  0x27   : > { %1012 = vmatpush3.bf16.msra.mxu1 %v993_v25 }
  0x29   : > { %942 = vmatmul.mubr.f32.vlgmr.msra.gmra.mrb[0].mxu0 %v337_v26 }
  0x2a   : > { %954 = vmatmul.mubr.f32.vlgmr.msra.gmra.mrb[0].mxu1 %v345_v27  ;;  %944 = vmatprep.mubr.f32.mxu0 %v338_v28 }
  0x2b   : > { %956 = vmatprep.mubr.f32.mxu1 %v346_v29 }
  0x2d   : > { %945 = vmatmul.mubr.f32.gmra.mrb[2].mxu0 %v339_v30 }
  0x2e   : > { %957 = vmatmul.mubr.f32.gmra.mrb[2].mxu1 %v347_v31  ;;  %947 = vmatprep.mubr.f32.mxu0 %v340_v32 }
  0x2f   : > { %959 = vmatprep.mubr.f32.mxu1 %v348_v33 }
  0x31   : > { %948 = vmatmul.mubr.f32.gmra.mrb[4].mxu0 %v341_v34 }
  0x32   : > { %960 = vmatmul.mubr.f32.gmra.mrb[4].mxu1 %v349_v35  ;;  %950 = vmatprep.mubr.f32.mxu0 %v342_v36 }
  0x33   : > { %962 = vmatprep.mubr.f32.mxu1 %v350_v37 }
  0x35   : > { %951 = vmatmul.mubr.f32.gmra.mrb[6].mxu0 %v343_v38 }
  0x36   : > { %963 = vmatmul.mubr.f32.gmra.mrb[6].mxu1 %v351_v39 }
  0xfc   : > { %v943_v41 = vpop.f32.mrb[0].mxu0 }
  0xfd   : > { %v955_v43 = vpop.f32.mrb[0].mxu1  ;;  %v572_v44 = vmul.f32 %v943_v41, %v1245_v40  ;;  %v434_v46 = vpop.f32.mrb[1].mxu0 }
  0xfe   : > { %v580_v45 = vmul.f32 %v955_v43, %v1245_v40  ;;  %v474_v47 = vpop.f32.mrb[1].mxu1  ;;  %v571_v48 = vmul.f32 %v1245_v40, %v434_v46 }
  0xff   : > { %v579_v49 = vmul.f32 %v1245_v40, %v474_v47  ;;  %v1257_v50 = vadd.f32 %v1250_v42, %v572_v44 }
 0x100   : > { %v1260_v51 = vadd.f32 %v1250_v42, %v580_v45  ;;  %v1263_v52 = vadd.f32 %v1250_v42, %v571_v48  ;;  %v946_v54 = vpop.f32.mrb[2].mxu0 }
 0x101   : > { %v1266_v53 = vadd.f32 %v1250_v42, %v579_v49  ;;  %v958_v55 = vpop.f32.mrb[2].mxu1  ;;  %v611_v56 = vsub.f32 0.0, %v1257_v50  ;;  %v574_v58 = vmul.f32 %v946_v54, %v1245_v40  ;;  %v444_v60 = vpop.f32.mrb[3].mxu0 }
 0x102   : > { %v619_v57 = vsub.f32 0.0, %v1260_v51  ;;  %v582_v59 = vmul.f32 %v958_v55, %v1245_v40  ;;  %v484_v61 = vpop.f32.mrb[3].mxu1  ;;  %v610_v62 = vsub.f32 0.0, %v1263_v52  ;;  %v573_v0 = vmul.f32 %v1245_v40, %v444_v60 }
 0x103   : > { %v618_v63 = vsub.f32 0.0, %v1266_v53  ;;  %v581_v1 = vmul.f32 %v1245_v40, %v484_v61  ;;  %v628_v2 = vmul.f32 1.442695, %v611_v56  ;;  %v1277_v4 = vadd.f32 %v1250_v42, %v574_v58 }
 0x104   : > { %v644_v3 = vmul.f32 1.442695, %v619_v57  ;;  %v1280_v5 = vadd.f32 %v1250_v42, %v582_v59  ;;  %v626_v6 = vmul.f32 1.442695, %v610_v62  ;;  %v1283_v8 = vadd.f32 %v1250_v42, %v573_v0  ;;  %v949_v10 = vpop.f32.mrb[4].mxu0 }
 0x105   : > { %v642_v7 = vmul.f32 1.442695, %v618_v63  ;;  %v1286_v9 = vadd.f32 %v1250_v42, %v581_v1  ;;  %v961_v11 = vpop.f32.mrb[4].mxu1  ;;  %1037 = vpow2.f32 %v628_v2  ;;  %v613_v12 = vsub.f32 0.0, %v1277_v4  ;;  %v454_v15 = vpop.f32.mrb[5].mxu0 }
 0x106   : > { %v621_v13 = vsub.f32 0.0, %v1280_v5  ;;  %v576_v14 = vmul.f32 %v949_v10, %v1245_v40  ;;  %v494_v16 = vpop.f32.mrb[5].mxu1  ;;  %1039 = vpow2.f32 %v644_v3  ;;  %v612_v17 = vsub.f32 0.0, %v1283_v8 }
 0x107   : > { %v620_v18 = vsub.f32 0.0, %v1286_v9  ;;  %v584_v19 = vmul.f32 %v961_v11, %v1245_v40  ;;  %1041 = vpow2.f32 %v626_v6  ;;  %v632_v20 = vmul.f32 1.442695, %v613_v12 }
 0x108   : > { %v648_v21 = vmul.f32 1.442695, %v621_v13  ;;  %v1295_v22 = vadd.f32 %v1250_v42, %v576_v14  ;;  %1043 = vpow2.f32 %v642_v7  ;;  %v630_v23 = vmul.f32 1.442695, %v612_v17  ;;  %v952_v26 = vpop.f32.mrb[6].mxu0 }
 0x109   : > { %v646_v24 = vmul.f32 1.442695, %v620_v18  ;;  %v1298_v25 = vadd.f32 %v1250_v42, %v584_v19  ;;  %v964_v27 = vpop.f32.mrb[6].mxu1  ;;  %1045 = vpow2.f32 %v632_v20  ;;  %v575_v29 = vmul.f32 %v1245_v40, %v454_v15  ;;  %v464_v30 = vpop.f32.mrb[7].mxu0 }
 0x10a   : > { %v615_v28 = vsub.f32 0.0, %v1295_v22  ;;  %v504_v31 = vpop.f32.mrb[7].mxu1  ;;  %1047 = vpow2.f32 %v648_v21  ;;  %v583_v36 = vmul.f32 %v1245_v40, %v494_v16  ;;  %v578_v38 = vmul.f32 %v952_v26, %v1245_v40 }
 0x10b   : > { %v623_v32 = vsub.f32 0.0, %v1298_v25  ;;  %1049 = vpow2.f32 %v630_v23  ;;  %v1304_v34 = vadd.f32 %v1250_v42, %v575_v29  ;;  %v586_v43 = vmul.f32 %v964_v27, %v1245_v40 }
 0x10c   : > { %v636_v33 = vmul.f32 1.442695, %v615_v28  ;;  %1051 = vpow2.f32 %v646_v24  ;;  %v1311_v46 = vadd.f32 %v1250_v42, %v583_v36  ;;  %v577_v47 = vmul.f32 %v1245_v40, %v464_v30 }
 0x10d   : > { %v652_v35 = vmul.f32 1.442695, %v623_v32  ;;  %v614_v37 = vsub.f32 0.0, %v1304_v34  ;;  %v1315_v54 = vadd.f32 %v1250_v42, %v578_v38  ;;  %v585_v55 = vmul.f32 %v1245_v40, %v504_v31 }
 0x10e   : > { %1053 = vpow2.f32 %v636_v33  ;;  %v1319_v60 = vadd.f32 %v1250_v42, %v586_v43  ;;  %v622_v63 = vsub.f32 0.0, %v1311_v46  ;;  %v1323_v0 = vadd.f32 %v1250_v42, %v577_v47 }
 0x10f   : > { %1055 = vpow2.f32 %v652_v35  ;;  %v1038_v39 = vpop.eup %1037  ;;  %v634_v41 = vmul.f32 1.442695, %v614_v37  ;;  %v617_v2 = vsub.f32 0.0, %v1315_v54  ;;  %v1327_v3 = vadd.f32 %v1250_v42, %v585_v55 }
 0x110   : > { %v1040_v44 = vpop.eup %1039  ;;  %v659_v45 = vadd.f32 1.0, %v1038_v39  ;;  %v625_v12 = vsub.f32 0.0, %v1319_v60  ;;  %v650_v15 = vmul.f32 1.442695, %v622_v63  ;;  %v616_v16 = vsub.f32 0.0, %v1323_v0 }
 0x111   : > { %v1042_v48 = vpop.eup %1041  ;;  %v667_v49 = vadd.f32 1.0, %v1040_v44  ;;  %1057 = vpow2.f32 %v634_v41  ;;  %v640_v18 = vmul.f32 1.442695, %v617_v2  ;;  %v624_v42 = vsub.f32 0.0, %v1327_v3 }
 0x112   : > { %v1044_v56 = vpop.eup %1043  ;;  %1059 = vrcp.f32 %v659_v45  ;;  %v658_v57 = vadd.f32 1.0, %v1042_v48  ;;  %v656_v20 = vmul.f32 1.442695, %v625_v12  ;;  %v638_v24 = vmul.f32 1.442695, %v616_v16 }
 0x113   : > { %v1046_v58 = vpop.eup %1045  ;;  %1061 = vrcp.f32 %v667_v49  ;;  %v666_v59 = vadd.f32 1.0, %v1044_v56  ;;  %v654_v28 = vmul.f32 1.442695, %v624_v42 }
 0x114   : > { %v1048_v61 = vpop.eup %1047  ;;  %1063 = vrcp.f32 %v658_v57  ;;  %v661_v62 = vadd.f32 1.0, %v1046_v58 }
 0x115   : > { %v1050_v1 = vpop.eup %1049  ;;  %1065 = vrcp.f32 %v666_v59  ;;  %v669_v40 = vadd.f32 1.0, %v1048_v61 }
 0x116   : > { %v1052_v6 = vpop.eup %1051  ;;  %1067 = vrcp.f32 %v661_v62  ;;  %v660_v7 = vadd.f32 1.0, %v1050_v1 }
 0x117   : > { %1069 = vrcp.f32 %v669_v40  ;;  %v668_v11 = vadd.f32 1.0, %v1052_v6 }
 0x118   : > { %v1054_v10 = vpop.eup %1053  ;;  %1071 = vrcp.f32 %v660_v7 }
 0x119   : > { %v1056_v13 = vpop.eup %1055  ;;  %v663_v14 = vadd.f32 1.0, %v1054_v10  ;;  %1073 = vrcp.f32 %v668_v11 }
 0x11a   : > { %v671_v17 = vadd.f32 1.0, %v1056_v13 }
 0x11b   : > { %1075 = vrcp.f32 %v663_v14  ;;  %v1058_v19 = vpop.eup %1057 }
 0x11c   : > { %1077 = vrcp.f32 %v671_v17  ;;  %v1060_v21 = vpop.eup %1059  ;;  %v662_v23 = vadd.f32 1.0, %v1058_v19 }
 0x11d   : > { %1079 = vpow2.f32 %v650_v15  ;;  %v1062_v26 = vpop.eup %1061  ;;  %v707_v27 = vmul.f32 %v1060_v21, %v1257_v50 }
 0x11e   : > { %1081 = vpow2.f32 %v640_v18  ;;  %v1064_v29 = vpop.eup %1063  ;;  %v715_v30 = vmul.f32 %v1062_v26, %v1260_v51 }
 0x11f   : > { %1083 = vrcp.f32 %v662_v23  ;;  %v1066_v31 = vpop.eup %1065  ;;  %723 = vst [vmem:[%s1337_s15 + $0x8] sm:$0xff] %v707_v27  ;;  %v706_v32 = vmul.f32 %v1064_v29, %v1263_v52 }
 0x120   : > { %1085 = vpow2.f32 %v656_v20  ;;  %v1068_v33 = vpop.eup %1067  ;;  %731 = vst [vmem:[%s1337_s15 + $0x48] sm:$0xff] %v715_v30  ;;  %v714_v35 = vmul.f32 %v1066_v31, %v1266_v53 }
 0x121   : > { %1087 = vpow2.f32 %v638_v24  ;;  %v1070_v50 = vpop.eup %1069  ;;  %722 = vst [vmem:[%s1337_s15] sm:$0xff] %v706_v32  ;;  %v709_v36 = vmul.f32 %v1068_v33, %v1277_v4 }
 0x122   : > { %1089 = vpow2.f32 %v654_v28  ;;  %v1072_v51 = vpop.eup %1071  ;;  %730 = vst [vmem:[%s1337_s15 + $0x40] sm:$0xff] %v714_v35  ;;  %v717_v37 = vmul.f32 %v1070_v50, %v1280_v5 }
 0x123   : > { %v1074_v52 = vpop.eup %1073  ;;  %725 = vst [vmem:[%s1337_s15 + $0x18] sm:$0xff] %v709_v36  ;;  %v708_v38 = vmul.f32 %v1072_v51, %v1283_v8 }
 0x124   : > { %733 = vst [vmem:[%s1337_s15 + $0x58] sm:$0xff] %v717_v37  ;;  %v716_v53 = vmul.f32 %v1074_v52, %v1286_v9 }
 0x125   : > { %v1076_v39 = vpop.eup %1075  ;;  %724 = vst [vmem:[%s1337_s15 + $0x10] sm:$0xff] %v708_v38 }
 0x126   : > { %v1078_v41 = vpop.eup %1077  ;;  %v711_v43 = vmul.f32 %v1076_v39, %v1295_v22  ;;  %732 = vst [vmem:[%s1337_s15 + $0x50] sm:$0xff] %v716_v53 }
 0x127   : > { %v1080_v4 = vpop.eup %1079  ;;  %v719_v44 = vmul.f32 %v1078_v41, %v1298_v25 }
 0x128   : > { %v1082_v45 = vpop.eup %1081  ;;  %727 = vst [vmem:[%s1337_s15 + $0x28] sm:$0xff] %v711_v43  ;;  %v670_v5 = vadd.f32 1.0, %v1080_v4 }
 0x129   : > { %v1084_v47 = vpop.eup %1083  ;;  %735 = vst [vmem:[%s1337_s15 + $0x68] sm:$0xff] %v719_v44  ;;  %v665_v48 = vadd.f32 1.0, %v1082_v45 }
 0x12a   : > { %v1086_v8 = vpop.eup %1085  ;;  %v710_v49 = vmul.f32 %v1084_v47, %v1304_v34  ;;  %1091 = vrcp.f32 %v670_v5 }
 0x12b   : > { %v1088_v9 = vpop.eup %1087  ;;  %1093 = vrcp.f32 %v665_v48  ;;  %v673_v22 = vadd.f32 1.0, %v1086_v8 }
 0x12c   : > { %v1090_v55 = vpop.eup %1089  ;;  %726 = vst [vmem:[%s1337_s15 + $0x20] sm:$0xff] %v710_v49  ;;  %v664_v56 = vadd.f32 1.0, %v1088_v9 }
 0x12d   : > { %1095 = vrcp.f32 %v673_v22  ;;  %v672_v25 = vadd.f32 1.0, %v1090_v55 }
 0x12e   : > { %1097 = vrcp.f32 %v664_v56 }
 0x12f   : > { %1099 = vrcp.f32 %v672_v25 }
 0x134   : > { %v1092_v57 = vpop.eup %1091 }
 0x135   : > { %v1094_v58 = vpop.eup %1093  ;;  %v718_v34 = vmul.f32 %v1092_v57, %v1311_v46 }
 0x136   : > { %v713_v59 = vmul.f32 %v1094_v58, %v1315_v54 }
 0x137   : > { %v1096_v61 = vpop.eup %1095  ;;  %734 = vst [vmem:[%s1337_s15 + $0x60] sm:$0xff] %v718_v34 }
 0x138   : > { %v1098_v62 = vpop.eup %1097  ;;  %729 = vst [vmem:[%s1337_s15 + $0x38] sm:$0xff] %v713_v59  ;;  %v721_v63 = vmul.f32 %v1096_v61, %v1319_v60 }
 0x139   : > { %v1100_v1 = vpop.eup %1099  ;;  %v712_v40 = vmul.f32 %v1098_v62, %v1323_v0 }
 0x13a   : > { %737 = vst [vmem:[%s1337_s15 + $0x78] sm:$0xff] %v721_v63  ;;  %v720_v2 = vmul.f32 %v1100_v1, %v1327_v3 }
 0x13b   : > { %728 = vst [vmem:[%s1337_s15 + $0x30] sm:$0xff] %v712_v40 }
 0x13c   : > { %736 = vst [vmem:[%s1337_s15 + $0x70] sm:$0xff] %v720_v2 }
 0x13d PF: > { %s14_s17 = sadd.s32 1, %s1123_s17   ;;  %s1385_s15 = smov %s1119_s16 }
 0x13e   : > { %p11_p5 = scmp.ge.s32.totalorder %s14_s17, 6   ;;  %s1386_s16 = smov %s1388_s18 }
 0x140   :  { %13 = sbr.rel (!%p11_p5) target bundleno = 2 (0x2), region = 83 }

</bundles_post_ra>
